<compile_context>
chip_gen: v7x
topology: tpu7x:2x2x1
jax: 0.10.0
libtpu: 0.0.40
codegen_flags: <defaults>
</compile_context>

<pallas_src>
import functools

import numpy as np
import jax
import jax.numpy as jnp
from jax.experimental import pallas as pl
from jax.experimental.pallas import tpu as pltpu

# One native int8 (sublane, lane) tile = 1 vreg.  Capacity: 4096 UTF-8 bytes.
_ROWS, _COLS = 32, 128
_CAPACITY = _ROWS * _COLS
_DTYPE = jnp.int8


def _const_emit_kernel(codes_ref, out_ref):
    # StrModule's entire "compute": emit the stored constant (identity copy
    # of the encoded-string buffer).  No reductions / matmuls / grid.
    out_ref[...] = codes_ref[...]


@functools.lru_cache(maxsize=None)
def _get_emit():
    """One shared traced+compiled emit callable for ALL StrModule instances.

    Shape/dtype are constant, so trace + Mosaic compile happen once per
    process.  Gridless single-block form: the whole array is one VMEM block
    (no grid / pipeline prologue).  input_output_aliases={0: 0} lets the
    output alias the input buffer of the identity copy.
    """
    emit = pl.pallas_call(
        _const_emit_kernel,
        out_shape=jax.ShapeDtypeStruct((_ROWS, _COLS), _DTYPE),
        in_specs=[pl.BlockSpec(memory_space=pltpu.MemorySpace.VMEM)],
        out_specs=pl.BlockSpec(memory_space=pltpu.MemorySpace.VMEM),
        input_output_aliases={0: 0},
    )
    return jax.jit(emit)


def _encode_str(s: str):
    """UTF-8 bytes -> zero-padded (32, 128) int8 array, or None if the string
    does not fit or contains a NUL byte (NUL is the decode sentinel)."""
    raw = s.encode("utf-8")
    if len(raw) > _CAPACITY or b"\x00" in raw:
        return None
    padded = raw + b"\x00" * (_CAPACITY - len(raw))
    np_codes = np.frombuffer(padded, dtype=np.uint8).view(np.int8)
    return jnp.asarray(np_codes.reshape(_ROWS, _COLS))


def _decode_str(arr) -> str:
    # Vectorized host decode: reinterpret int8 bits as bytes, strip padding.
    raw = np.asarray(arr).view(np.uint8).tobytes()
    return raw.rstrip(b"\x00").decode("utf-8")


class StrModule:
    """JAX/Pallas port of AutoGL's StrModule.

    forward(*args, **kwargs) ignores all inputs and returns the stored Python
    string -- identical semantics to the PyTorch module.  Neither __init__ nor
    forward() touches the device; the optional device-side constant is
    materialized lazily through one process-wide compiled Pallas kernel.
    """

    def __init__(self, lambd: str):
        self.str = lambd
        self._codes_device = None  # lazily materialized, memoized

    def __call__(self, *args, **kwargs):
        return self.forward(*args, **kwargs)

    def forward(self, *args, **kwargs):
        # Inputs are intentionally ignored, as in the PyTorch module.
        # Pure host-side return: no kernel launch, no device sync per call.
        return self.str

    def device_codes(self):
        """Lazily emit the encoded string through the shared Pallas kernel.

        Returns the (32, 128) int8 device array, or None if the string is not
        representable (> 4096 UTF-8 bytes or contains NUL); in that case the
        string lives host-side only, matching PyTorch semantics exactly.
        """
        if self._codes_device is None:
            codes = _encode_str(self.str) if isinstance(self.str, str) else None
            if codes is not None:
                self._codes_device = _get_emit()(codes)
        return self._codes_device

    def __repr__(self):
        return "{}({})".format(self.__class__.__name__, self.str)


if __name__ == "__main__":
    key = jax.random.PRNGKey(0)
    # Example inputs (ignored by forward, just like in PyTorch).
    x = jax.random.normal(key, (2, 4, 16, 16), dtype=jnp.float32)

    mod = StrModule("gat_8")

    # Hot path: pure host return -- no kernel launch, no device sync.
    out = mod(x, extra_kwarg=123)
    assert isinstance(out, str) and out == "gat_8", out
    for _ in range(3):
        assert mod(x) == "gat_8"

    # Run the shared Pallas constant-emit kernel once; block and verify.
    codes = mod.device_codes()
    assert codes is not None
    jax.block_until_ready(codes)
    assert _decode_str(codes) == "gat_8"

    # Memoized per instance (no relaunch) and the compiled callable is shared
    # across instances (no retrace / recompile for mod2).
    assert mod.device_codes() is codes
    mod2 = StrModule("gcn_4")
    codes2 = mod2.device_codes()
    jax.block_until_ready(codes2)
    assert _decode_str(codes2) == "gcn_4"

    # TODO(synk): strings with NUL bytes or > 4096 UTF-8 bytes have no device
    # artifact (device_codes() is None); they are stored host-side verbatim,
    # which already matches the PyTorch semantics exactly.

    print("KERNEL_OK")
</pallas_src>

<mosaic_0001>
module attributes {stable_mosaic.version = 11 : i64} {
  func.func @_const_emit_kernel(%arg0: memref<32x128xi8, #tpu.memory_space<vmem>>, %arg1: memref<32x128xi8, #tpu.memory_space<vmem>>) attributes {dimension_semantics = [], scalar_prefetch = 0 : i64, scratch_operands = 0 : i64, tpu.core_type = #tpu.core_type<tc>} {
    %c0 = arith.constant 0 : index
    %c0_0 = arith.constant 0 : index
    %0 = vector.load %arg0[%c0, %c0_0] : memref<32x128xi8, #tpu.memory_space<vmem>>, vector<32x128xi8>
    %c0_1 = arith.constant 0 : index
    %c0_2 = arith.constant 0 : index
    %1 = vector.load %arg1[%c0_1, %c0_2] : memref<32x128xi8, #tpu.memory_space<vmem>>, vector<32x128xi8>
    tpu.vector_store %arg1[%c0_1, %c0_2], %0 {strides = array<i32>} : memref<32x128xi8, #tpu.memory_space<vmem>>, vector<32x128xi8>,
    return
  }
}

</mosaic_0001>

<bundles_post_ra>
// kernel: tpu_custom_call.1
= control target key start
LH: loop header
LB: loop body
LE: loop exit
PB: predicated region body
PF: predicated region fallthrough
CT: control target
= control target key end

     0   :  { %6 = vsyncpa [#allocation3], 0  ;;  %s124_s0 = inlined_call_operand.hbm [shape: s8[32,128], index: 0, kind: input, shape index: {}, may-alias: {0,1}]   ;;  %s125_s1 = inlined_call_operand.hbm [shape: s8[32,128], index: 1, kind: output, shape index: {}, may-alias: {0,1}]  }
   0x1   :  { %7 = vsyncpa [#allocation4], 0  ;;  %s88_s6 = smov [#allocation2]   ;;  %s40_s10 = scalar_lea.hbm %s124_s0, 128 }
   0x2   :  { %s14_s7 = sshll.u32 %s88_s6, 4  ;;  %p41_p0 = scmp.ne.s32.totalorder %s124_s0, %s40_s10  ;;  %s15_s7 = int_to_ptr.vmem [resolvable:$true] %s14_s7 }
   0x3   :  { %p44_p1 = scmp.lt.u32.totalorder %s40_s10, %s124_s0 }
   0x5   :  { %p46_p2 = pnand %p44_p1, %p41_p0 }
   0x7   :  { %49 = shalt.err (!%p46_p2)
}
   0x8   :  { %s50_s15 = scalar_lea.vmem %s15_s7, 128  ;;  %p55_p4 = scmp.lt.s32.totalorder %s15_s7, %s15_s7 }
   0x9   :  { %p51_p3 = scmp.ne.s32.totalorder %s15_s7, %s50_s15  ;;  %p56_p5 = scmp.lt.s32.totalorder %s50_s15, %s50_s15 }
   0xb   :  { %p57_p6 = por %p56_p5, %p55_p4 }
   0xd   :  { %p58_p7 = pnand %p57_p6, %p51_p3 }
   0xf   :  { %61 = shalt.err (!%p58_p7)
}
  0x10   :  { %17 = dma.hbm_to_vmem [thread:$0]  %s124_s0, 128, %s15_s7, [#allocation3]  }
  0x11   :  { %84 = dma.done.wait [#allocation3], 128  }
  0x12   :  { %85 = vsyncadd [#allocation3], 4294967168  ;;  %s89_s18 = smov [#allocation5]   ;;  %v21_v0 = vld [vmem:[#allocation2] sm:$0xff] }
  0x13   :  { %s29_s19 = sshll.u32 %s89_s18, 4  ;;  %22 = vst [vmem:[#allocation5] sm:$0xff] %v21_v0  ;;  %s30_s19 = int_to_ptr.vmem [resolvable:$true] %s29_s19 }
  0x14   :  { %s62_s20 = scalar_lea.vmem %s30_s19, 128  ;;  %p67_p9 = scmp.lt.s32.totalorder %s30_s19, %s30_s19 }
  0x15   :  { %p63_p8 = scmp.ne.s32.totalorder %s30_s19, %s62_s20  ;;  %p68_p10 = scmp.lt.s32.totalorder %s62_s20, %s62_s20 }
  0x17   :  { %p69_p11 = por %p68_p10, %p67_p9 }
  0x19   :  { %p70_p12 = pnand %p69_p11, %p63_p8 }
  0x1b   :  { %73 = shalt.err (!%p70_p12)
}
  0x1c   :  { %s74_s23 = scalar_lea.hbm %s125_s1, 128 }
  0x1d   :  { %p75_p13 = scmp.ne.s32.totalorder %s125_s1, %s74_s23  ;;  %p78_p0 = scmp.lt.u32.totalorder %s74_s23, %s125_s1 }
  0x1f   :  { %p80_p1 = pnand %p78_p0, %p75_p13 }
  0x21   :  { %83 = shalt.err (!%p80_p1)
}
  0x22   :  { %32 = dma.vmem_to_hbm [thread:$0]  %s30_s19, 128, %s125_s1, [#allocation4]  }
  0x23   :  { %86 = dma.done.wait [#allocation4], 128  }
  0x24   :  { %87 = vsyncadd [#allocation4], 4294967168 }
  0x25   :  { %36 = vsyncpa [#allocation3], 1 }
  0x26   :  { %37 = vsyncpa [#allocation4], 1 }

</bundles_post_ra>
